<compile_context>
chip_gen: v7x
topology: tpu7x:2x2x1
jax: 0.10.0
libtpu: 0.0.40
codegen_flags: <defaults>
</compile_context>

<pallas_src>
import jax
import jax.numpy as jnp
from jax.experimental import pallas as pl
from jax.experimental.pallas import tpu as pltpu

CLASS_NAMES = ["raising_hand", "reading", "sleeping", "using_phone", "writing"]
NUM_CLASSES = len(CLASS_NAMES)
NC_PAD = 128              # class axis padded to a full lane width
MAX_TILE_B = 256          # batch-tile cap (v6e/v7x MXU rows; use 128 on v5e)

H = W = 16                # synthetic classifier spatial size (original: 224)
C = 3
HW = H * W                # 256
SRC_H, SRC_W = 20, 24     # raw input image size (fixed / static)
K_IN = SRC_H * SRC_W * C  # 1440 = contraction dim seen by the kernel (raw HWC pixels)

_IMAGENET_MEAN = (0.485, 0.456, 0.406)
_IMAGENET_STD = (0.229, 0.224, 0.225)
_NEG_BIG = -1e30          # logit value for padded (non-existent) classes


# --------------------------------------------------------------------------
# Kernel: one batch tile of raw pixels -> padded softmax probabilities
# --------------------------------------------------------------------------
def _classifier_kernel(x_ref, w_hbm, b_hbm, probs_ref, w_vmem, b_vmem):
    """Fused (resize+normalize+linear) head + softmax for one batch tile.

    x_ref:     (TB, K_IN)     bf16  raw [0,1] pixels, HWC-flattened
    w_hbm:     (K_IN, NC_PAD) bf16  HBM ref: resize+normalize-folded weight
    b_hbm:     (1, NC_PAD)    f32   HBM ref: folded bias (-1e30 on padded lanes)
    probs_ref: (TB, NC_PAD)   f32   softmax scores (padded lanes ~ 0)
    w_vmem / b_vmem: resident VMEM copies (single-buffered scratch).
    """
    # Copy the constant-index weight/bias into VMEM exactly once; scratch
    # persists across grid steps.  Grid axis is "arbitrary" (sequential), so
    # the i==0 guard is safe.  (No double-buffering of the resident weight.)
    @pl.when(pl.program_id(0) == 0)
    def _():
        pltpu.sync_copy(w_hbm, w_vmem)
        pltpu.sync_copy(b_hbm, b_vmem)

    # Single lane-dense MXU contraction: (TB, 1440) @ (1440, 128) -> (TB, 128)
    logits = jnp.dot(
        x_ref[...], w_vmem[...], preferred_element_type=jnp.float32
    ) + b_vmem[...]

    # Numerically-stable f32 softmax over the (padded) class lanes.
    m = jnp.max(logits, axis=-1, keepdims=True)
    e = jnp.exp(logits - m)                       # padded lanes underflow to 0
    denom = jnp.sum(e, axis=-1, keepdims=True)
    probs_ref[...] = e / denom                    # exact division (keeps 1e-4 tol)


def _run_kernel(x, w_pad, b_pad, tile_b):
    """x: (B, K_IN) bf16 with B a multiple of tile_b. Returns (B, NC_PAD) f32."""
    B = x.shape[0]
    grid = (B // tile_b,)
    return pl.pallas_call(
        _classifier_kernel,
        out_shape=jax.ShapeDtypeStruct((B, NC_PAD), jnp.float32),
        grid_spec=pltpu.PrefetchScalarGridSpec(
            num_scalar_prefetch=0,
            grid=grid,
            in_specs=[
                pl.BlockSpec((tile_b, K_IN), lambda i: (i, 0)),   # batch tile
                pl.BlockSpec(memory_space=pl.ANY),                # weight stays in HBM
                pl.BlockSpec(memory_space=pl.ANY),                # bias stays in HBM
            ],
            out_specs=pl.BlockSpec((tile_b, NC_PAD), lambda i: (i, 0)),
            scratch_shapes=[
                pltpu.VMEM((K_IN, NC_PAD), jnp.bfloat16),         # resident weight
                pltpu.VMEM((1, NC_PAD), jnp.float32),             # resident bias
            ],
        ),
        # "arbitrary": the one-shot weight copy at i==0 requires a sequential
        # grid.  (Demo grid is (1,) anyway; for multi-tile v7x megacore, switch
        # back to a BlockSpec-resident weight and mark this "parallel".)
        compiler_params=pltpu.CompilerParams(
            dimension_semantics=("arbitrary",),
            vmem_limit_bytes=32 * 1024 * 1024,
        ),
    )(x, w_pad, b_pad)


# --------------------------------------------------------------------------
# Host-side parameter preparation (offline, once)
# --------------------------------------------------------------------------
def init_params(key):
    """Deterministic synthetic classifier head (checkpoint arch unknown)."""
    kw, kb = jax.random.split(key)
    weight = jax.random.normal(kw, (C, HW, NUM_CLASSES), dtype=jnp.float32) * 0.05
    bias = jax.random.normal(kb, (NUM_CLASSES,), dtype=jnp.float32) * 0.01
    return weight, bias


def fold_and_pad_params(weight, bias):
    """Fold Normalize AND bilinear Resize into (W, b); pad classes to 128 lanes.

      logits_k = sum_{c,hw} ((R x_raw)[c,hw] - mean_c)/std_c * W[c,hw,k] + b_k
               = sum_{c,p}  x_raw[c,p] * (R^T (W[:,:,k]/std_c))[c,p]
                 + (b_k - sum_{c,hw} (mean_c/std_c) * W[c,hw,k])

    The weight is additionally reordered to raw-HWC pixel order so the kernel
    consumes images_hwc.reshape(B, SRC_H*SRC_W*C) directly (no transpose).
    """
    mean = jnp.asarray(_IMAGENET_MEAN, jnp.float32)
    inv_std = 1.0 / jnp.asarray(_IMAGENET_STD, jnp.float32)

    # --- fold Normalize ---
    w_n = weight * inv_std[:, None, None]                            # (C, HW, NC)
    b_n = bias - jnp.einsum("c,chk->k", mean * inv_std, weight)      # (NC,)

    # --- fold bilinear Resize: vec(resize(img)) = R @ vec(img), R: (HW, P0) ---
    p0 = SRC_H * SRC_W
    eye = jnp.eye(p0, dtype=jnp.float32).reshape(p0, SRC_H, SRC_W)
    R = jax.image.resize(eye, (p0, H, W), method="bilinear").reshape(p0, HW).T

    w_eff = jnp.einsum("hp,chk->cpk", R, w_n)                        # (C, P0, NC)
    # reorder (c, p) -> (p, c) == raw HWC flatten order
    w_hwc = jnp.transpose(w_eff, (1, 0, 2)).reshape(p0 * C, NUM_CLASSES)

    w_pad = jnp.zeros((K_IN, NC_PAD), jnp.float32).at[:, :NUM_CLASSES].set(w_hwc)
    b_pad = (
        jnp.full((1, NC_PAD), _NEG_BIG, jnp.float32)
        .at[0, :NUM_CLASSES]
        .set(b_n)
    )
    # bf16 operands for the MXU (halves weight DMA / vreg footprint); f32 bias.
    return w_pad.astype(jnp.bfloat16), b_pad


# --------------------------------------------------------------------------
# Jitted forward: flatten + kernel + argmax/score
# --------------------------------------------------------------------------
def _pick_tile_b(batch):
    b8 = ((batch + 7) // 8) * 8
    return min(b8, MAX_TILE_B)


@jax.jit
def classifier_forward_batch(images_hwc, w_pad, b_pad):
    """images_hwc: (B, SRC_H, SRC_W, 3) float32 in [0,1] (ToTensor-style range).

    Returns (probs (B, NUM_CLASSES), preds (B,), scores (B,)).
    """
    B0 = images_hwc.shape[0]
    # ToTensor / Resize / Normalize are all folded into w_pad: just flatten.
    x = images_hwc.reshape(B0, K_IN).astype(jnp.bfloat16)

    tile_b = _pick_tile_b(B0)                 # whole padded batch for small B
    pad = (-B0) % tile_b
    if pad:
        x = jnp.concatenate([x, jnp.zeros((pad, K_IN), jnp.bfloat16)], axis=0)

    probs_padded = _run_kernel(x, w_pad, b_pad, tile_b)
    probs = probs_padded[:B0, :NUM_CLASSES]

    # torch.max(output, dim=1) equivalent (first-max tie behavior).
    preds = jnp.argmax(probs, axis=-1)
    scores = jnp.max(probs, axis=-1)
    return probs, preds, scores


def classifier_forward(image_hwc, w_pad, b_pad):
    """Module-equivalent single-image API: returns (class_name, score)."""
    probs, preds, scores = classifier_forward_batch(image_hwc[None], w_pad, b_pad)
    preds, scores = jax.block_until_ready((preds, scores))
    idx = int(preds[0])
    return CLASS_NAMES[idx], float(scores[0])


# --------------------------------------------------------------------------
if __name__ == "__main__":
    key = jax.random.PRNGKey(0)
    k_img, k_params = jax.random.split(key)

    # Small synthetic batch of HWC images in [0,1].
    B = 16
    images = jax.random.uniform(k_img, (B, SRC_H, SRC_W, C), dtype=jnp.float32)

    weight, bias = init_params(k_params)
    w_pad, b_pad = fold_and_pad_params(weight, bias)

    probs, preds, scores = classifier_forward_batch(images, w_pad, b_pad)
    probs, preds, scores = jax.block_until_ready((probs, preds, scores))

    # ---- Reference A: same folded bf16 math in plain JAX (kernel numerics) ----
    x_bf = images.reshape(B, K_IN).astype(jnp.bfloat16)
    logits_bf = jnp.dot(x_bf, w_pad, preferred_element_type=jnp.float32) + b_pad
    probs_bf = jax.nn.softmax(logits_bf, axis=-1)[:, :NUM_CLASSES]
    preds_bf = jnp.argmax(probs_bf, axis=-1)
    assert jnp.array_equal(preds, preds_bf), (preds, preds_bf)
    assert float(jnp.max(jnp.abs(probs - probs_bf))) < 1e-4

    # ---- Reference B: original un-folded f32 chain (ToTensor->Resize->Norm->FC) ----
    x_chw = jnp.transpose(images, (0, 3, 1, 2))
    x_rs = jax.image.resize(x_chw, (B, C, H, W), method="bilinear")
    mean = jnp.asarray(_IMAGENET_MEAN, jnp.float32).reshape(1, C, 1, 1)
    std = jnp.asarray(_IMAGENET_STD, jnp.float32).reshape(1, C, 1, 1)
    xn = ((x_rs - mean) / std).reshape(B, C * HW)
    logits_ref = xn @ weight.reshape(C * HW, NUM_CLASSES) + bias[None, :]
    probs_ref = jax.nn.softmax(logits_ref, axis=-1)
    # Loose tolerance: kernel operands are explicitly bf16.
    assert float(jnp.max(jnp.abs(probs - probs_ref))) < 2e-2

    # Module-equivalent single-image call: (class_name, score).
    name, score = classifier_forward(images[0], w_pad, b_pad)
    assert name == CLASS_NAMES[int(preds_bf[0])], (name, int(preds_bf[0]))
    assert 0.0 <= score <= 1.0

    print("KERNEL_OK")
</pallas_src>

<mosaic_0001>
module attributes {stable_mosaic.version = 11 : i64} {
  func.func @_classifier_kernel(%arg0: i32, %arg1: memref<16x1440xbf16, #tpu.memory_space<vmem>>, %arg2: memref<1440x128xbf16, #tpu.memory_space<any>>, %arg3: memref<1x128xf32, #tpu.memory_space<any>>, %arg4: memref<16x128xf32, #tpu.memory_space<vmem>>, %arg5: memref<1440x128xbf16, #tpu.memory_space<vmem>>, %arg6: memref<1x128xf32, #tpu.memory_space<vmem>>) attributes {dimension_semantics = [#tpu.dimension_semantics<arbitrary>], iteration_bounds = array<i64: 1>, scalar_prefetch = 0 : i64, scratch_operands = 2 : i64, tpu.core_type = #tpu.core_type<tc>, window_params = [{transform_indices = @transform_0, window_bounds = array<i64: 16, 1440>}, {}, {}, {transform_indices = @transform_3, window_bounds = array<i64: 16, 128>}]} {
    %c0_i32 = arith.constant 0 : i32
    %0 = arith.cmpi eq, %arg0, %c0_i32 : i32
    %1 = arith.extui %0 : i1 to i32
    %c0_i32_0 = arith.constant 0 : i32
    %2 = arith.cmpi ne, %1, %c0_i32_0 : i32
    scf.if %2 {
      "tpu.region"() ({
        %19 = tpu.sem_alloc : memref<!tpu.dma_semaphore, #tpu.memory_space<semaphore_mem>>
        tpu.enqueue_dma source(%arg2 : memref<1440x128xbf16, #tpu.memory_space<any>>) target(%arg5 : memref<1440x128xbf16, #tpu.memory_space<vmem>>) target_semaphore(%19 : memref<!tpu.dma_semaphore, #tpu.memory_space<semaphore_mem>>)
        tpu.wait_dma2 semaphore(%19 : memref<!tpu.dma_semaphore, #tpu.memory_space<semaphore_mem>>) src(%arg2 : memref<1440x128xbf16, #tpu.memory_space<any>>) dst(%arg5 : memref<1440x128xbf16, #tpu.memory_space<vmem>>)
        tpu.yield
      }) : () -> ()
      "tpu.region"() ({
        %19 = tpu.sem_alloc : memref<!tpu.dma_semaphore, #tpu.memory_space<semaphore_mem>>
        tpu.enqueue_dma source(%arg3 : memref<1x128xf32, #tpu.memory_space<any>>) target(%arg6 : memref<1x128xf32, #tpu.memory_space<vmem>>) target_semaphore(%19 : memref<!tpu.dma_semaphore, #tpu.memory_space<semaphore_mem>>)
        tpu.wait_dma2 semaphore(%19 : memref<!tpu.dma_semaphore, #tpu.memory_space<semaphore_mem>>) src(%arg3 : memref<1x128xf32, #tpu.memory_space<any>>) dst(%arg6 : memref<1x128xf32, #tpu.memory_space<vmem>>)
        tpu.yield
      }) : () -> ()
    } else {
    }
    %c0 = arith.constant 0 : index
    %c0_1 = arith.constant 0 : index
    %3 = vector.load %arg1[%c0, %c0_1] : memref<16x1440xbf16, #tpu.memory_space<vmem>>, vector<16x1440xbf16>
    %c0_2 = arith.constant 0 : index
    %c0_3 = arith.constant 0 : index
    %4 = vector.load %arg5[%c0_2, %c0_3] : memref<1440x128xbf16, #tpu.memory_space<vmem>>, vector<1440x128xbf16>
    %cst = arith.constant dense<0.000000e+00> : vector<16x128xf32>
    %5 = tpu.matmul %3, %4, %cst {dimension_numbers = #tpu.dot_dimension_numbers<[1], [0], [0], [1], [0, 0, 1, 1], [], []>} : vector<16x1440xbf16>, vector<1440x128xbf16>, vector<16x128xf32> -> vector<16x128xf32>
    %c0_4 = arith.constant 0 : index
    %c0_5 = arith.constant 0 : index
    %6 = vector.load %arg6[%c0_4, %c0_5] : memref<1x128xf32, #tpu.memory_space<vmem>>, vector<1x128xf32>
    %7 = vector.broadcast %6 : vector<1x128xf32> to vector<16x128xf32>
    %8 = arith.addf %5, %7 : vector<16x128xf32>
    %cst_6 = arith.constant dense<0xFF800000> : vector<16xf32>
    %9 = vector.multi_reduction <maximumf>, %8, %cst_6 [1] : vector<16x128xf32> to vector<16xf32>
    %10 = vector.shape_cast %9 : vector<16xf32> to vector<16x1xf32>
    %11 = vector.broadcast %10 : vector<16x1xf32> to vector<16x128xf32>
    %12 = arith.subf %8, %11 : vector<16x128xf32>
    %13 = math.exp %12 : vector<16x128xf32>
    %cst_7 = arith.constant dense<0.000000e+00> : vector<16xf32>
    %14 = vector.multi_reduction <add>, %13, %cst_7 [1] : vector<16x128xf32> to vector<16xf32>
    %15 = vector.shape_cast %14 : vector<16xf32> to vector<16x1xf32>
    %16 = vector.broadcast %15 : vector<16x1xf32> to vector<16x128xf32>
    %17 = arith.divf %13, %16 : vector<16x128xf32>
    %c0_8 = arith.constant 0 : index
    %c0_9 = arith.constant 0 : index
    %18 = vector.load %arg4[%c0_8, %c0_9] : memref<16x128xf32, #tpu.memory_space<vmem>>, vector<16x128xf32>
    tpu.vector_store %arg4[%c0_8, %c0_9], %17 {strides = array<i32>} : memref<16x128xf32, #tpu.memory_space<vmem>>, vector<16x128xf32>,
    return
  }
  func.func @transform_0(%arg0: i32) -> (i32, i32) {
    %c0_i32 = arith.constant 0 : i32
    %c0_i32_0 = arith.constant 0 : i32
    return %arg0, %c0_i32 : i32, i32
  }
  func.func @transform_3(%arg0: i32) -> (i32, i32) {
    %c0_i32 = arith.constant 0 : i32
    %c0_i32_0 = arith.constant 0 : i32
    return %arg0, %c0_i32 : i32, i32
  }
}

</mosaic_0001>

<bundles_post_ra>
// kernel: classifier_forward_batch.1
= control target key start
LH: loop header
LB: loop body
LE: loop exit
PB: predicated region body
PF: predicated region fallthrough
CT: control target
= control target key end

     0   :  { %s1507_s0 = inlined_call_operand.vmem [shape: bf16[16,1440], index: 0, kind: input, shape index: {}]   ;;  %s1508_s1 = inlined_call_operand.vmem [shape: bf16[1440,128], index: 1, kind: input, shape index: {}]   ;;  %s1509_s2 = inlined_call_operand.vmem [shape: f32[1,128], index: 2, kind: input, shape index: {}]   ;;  %s1510_s3 = inlined_call_operand.vmem [shape: f32[16,128], index: 3, kind: output, shape index: {}]  }
   0x1   :  { %v925_v0 = vld [vmem:[%s1508_s1] sm:$0xff]  ;;  %v930_v1 = vld [vmem:[%s1508_s1 + $0x8] sm:$0xff]  ;;  %v935_v2 = vld [vmem:[%s1508_s1 + $0x10] sm:$0xff] }
   0x2   :  { %v940_v3 = vld [vmem:[%s1508_s1 + $0x18] sm:$0xff]  ;;  %v945_v4 = vld [vmem:[%s1508_s1 + $0x20] sm:$0xff]  ;;  %v950_v5 = vld [vmem:[%s1508_s1 + $0x28] sm:$0xff] }
   0x3   :  { %v955_v6 = vld [vmem:[%s1508_s1 + $0x30] sm:$0xff]  ;;  %v960_v7 = vld [vmem:[%s1508_s1 + $0x38] sm:$0xff]  ;;  %v965_v8 = vld [vmem:[%s1508_s1 + $0x40] sm:$0xff] }
   0x4   :  { %v970_v9 = vld [vmem:[%s1508_s1 + $0x48] sm:$0xff]  ;;  %v975_v10 = vld [vmem:[%s1508_s1 + $0x50] sm:$0xff]  ;;  %v980_v11 = vld [vmem:[%s1508_s1 + $0x58] sm:$0xff] }
   0x5   :  { %v985_v12 = vld [vmem:[%s1508_s1 + $0x60] sm:$0xff]  ;;  %v990_v13 = vld [vmem:[%s1508_s1 + $0x68] sm:$0xff]  ;;  %v995_v14 = vld [vmem:[%s1508_s1 + $0x70] sm:$0xff] }
   0x6   :  { %v1000_v15 = vld [vmem:[%s1508_s1 + $0x78] sm:$0xff]  ;;  %v1005_v16 = vld [vmem:[%s1508_s1 + $0x80] sm:$0xff]  ;;  %v1010_v17 = vld [vmem:[%s1508_s1 + $0x88] sm:$0xff] }
   0x7   :  { %v1015_v18 = vld [vmem:[%s1508_s1 + $0x90] sm:$0xff]  ;;  %v1020_v19 = vld [vmem:[%s1508_s1 + $0x98] sm:$0xff]  ;;  %v1025_v20 = vld [vmem:[%s1508_s1 + $0xa0] sm:$0xff] }
   0x8   :  { %v1030_v21 = vld [vmem:[%s1508_s1 + $0xa8] sm:$0xff]  ;;  %v1035_v22 = vld [vmem:[%s1508_s1 + $0xb0] sm:$0xff]  ;;  %v1040_v23 = vld [vmem:[%s1508_s1 + $0xb8] sm:$0xff] }
   0x9   :  { %v1045_v24 = vld [vmem:[%s1508_s1 + $0xc0] sm:$0xff]  ;;  %v1050_v25 = vld [vmem:[%s1508_s1 + $0xc8] sm:$0xff]  ;;  %v1055_v26 = vld [vmem:[%s1508_s1 + $0xd0] sm:$0xff] }
   0xa   :  { %v1060_v27 = vld [vmem:[%s1508_s1 + $0xd8] sm:$0xff]  ;;  %v1065_v28 = vld [vmem:[%s1508_s1 + $0xe0] sm:$0xff]  ;;  %v1070_v29 = vld [vmem:[%s1508_s1 + $0xe8] sm:$0xff] }
   0xb   :  { %v1075_v30 = vld [vmem:[%s1508_s1 + $0xf0] sm:$0xff]  ;;  %v1080_v31 = vld [vmem:[%s1508_s1 + $0xf8] sm:$0xff]  ;;  %v1085_v32 = vld [vmem:[%s1508_s1 + $0x100] sm:$0xff] }
   0xc   :  { %v1090_v33 = vld [vmem:[%s1508_s1 + $0x108] sm:$0xff]  ;;  %v1095_v34 = vld [vmem:[%s1508_s1 + $0x110] sm:$0xff]  ;;  %v1100_v35 = vld [vmem:[%s1508_s1 + $0x118] sm:$0xff] }
   0xd   :  { %v1105_v36 = vld [vmem:[%s1508_s1 + $0x120] sm:$0xff]  ;;  %v1110_v37 = vld [vmem:[%s1508_s1 + $0x128] sm:$0xff]  ;;  %v1115_v38 = vld [vmem:[%s1508_s1 + $0x130] sm:$0xff] }
   0xe   :  { %v1120_v39 = vld [vmem:[%s1508_s1 + $0x138] sm:$0xff]  ;;  %v1125_v40 = vld [vmem:[%s1508_s1 + $0x140] sm:$0xff]  ;;  %v1130_v41 = vld [vmem:[%s1508_s1 + $0x148] sm:$0xff] }
   0xf   :  { %1511 = vst [vmem:[#allocation10_spill] sm:$0xff] %v1120_v39  ;;  %v1135_v42 = vld [vmem:[%s1508_s1 + $0x150] sm:$0xff]  ;;  %v1140_v43 = vld [vmem:[%s1508_s1 + $0x158] sm:$0xff]  ;;  %v1145_v44 = vld [vmem:[%s1508_s1 + $0x160] sm:$0xff] }
  0x10   :  { %v1150_v45 = vld [vmem:[%s1508_s1 + $0x168] sm:$0xff]  ;;  %v1155_v46 = vld [vmem:[%s1508_s1 + $0x170] sm:$0xff]  ;;  %v1160_v47 = vld [vmem:[%s1508_s1 + $0x178] sm:$0xff] }
  0x11   :  { %1512 = vst [vmem:[#allocation11_spill] sm:$0xff] %v1160_v47  ;;  %v1165_v48 = vld [vmem:[%s1508_s1 + $0x180] sm:$0xff]  ;;  %v1170_v49 = vld [vmem:[%s1508_s1 + $0x188] sm:$0xff]  ;;  %v1175_v50 = vld [vmem:[%s1508_s1 + $0x190] sm:$0xff] }
  0x12   :  { %v1180_v51 = vld [vmem:[%s1508_s1 + $0x198] sm:$0xff]  ;;  %v1185_v52 = vld [vmem:[%s1508_s1 + $0x1a0] sm:$0xff]  ;;  %v1190_v53 = vld [vmem:[%s1508_s1 + $0x1a8] sm:$0xff] }
  0x13   :  { %v1195_v54 = vld [vmem:[%s1508_s1 + $0x1b0] sm:$0xff]  ;;  %v1200_v55 = vld [vmem:[%s1508_s1 + $0x1b8] sm:$0xff]  ;;  %v1205_v56 = vld [vmem:[%s1508_s1 + $0x1c0] sm:$0xff] }
  0x14   :  { %1513 = vst [vmem:[#allocation12_spill] sm:$0xff] %v1195_v54  ;;  %1514 = vst [vmem:[#allocation13_spill] sm:$0xff] %v1200_v55  ;;  %v1210_v57 = vld [vmem:[%s1508_s1 + $0x1c8] sm:$0xff]  ;;  %v1215_v58 = vld [vmem:[%s1508_s1 + $0x1d0] sm:$0xff] }
  0x15   :  { %v1220_v59 = vld [vmem:[%s1508_s1 + $0x1d8] sm:$0xff]  ;;  %v1225_v60 = vld [vmem:[%s1508_s1 + $0x1e0] sm:$0xff]  ;;  %v1230_v61 = vld [vmem:[%s1508_s1 + $0x1e8] sm:$0xff] }
  0x16   :  { %v1235_v62 = vld [vmem:[%s1508_s1 + $0x1f0] sm:$0xff]  ;;  %v1240_v63 = vld [vmem:[%s1508_s1 + $0x1f8] sm:$0xff]  ;;  %v1245_v55 = vld [vmem:[%s1508_s1 + $0x200] sm:$0xff] }
  0x17   :  { %1515 = vst [vmem:[#allocation14_spill] sm:$0xff] %v1240_v63  ;;  %1516 = vst [vmem:[#allocation15_spill] sm:$0xff] %v1245_v55  ;;  %v1250_v39 = vld [vmem:[%s1508_s1 + $0x208] sm:$0xff]  ;;  %v1255_v47 = vld [vmem:[%s1508_s1 + $0x210] sm:$0xff] }
  0x18   :  { %1517 = vst [vmem:[#allocation16_spill] sm:$0xff] %v1250_v39  ;;  %1518 = vst [vmem:[#allocation17_spill] sm:$0xff] %v1255_v47  ;;  %v1260_v54 = vld [vmem:[%s1508_s1 + $0x218] sm:$0xff]  ;;  %v1265_v63 = vld [vmem:[%s1508_s1 + $0x220] sm:$0xff] }
  0x19   :  { %1519 = vst [vmem:[#allocation18_spill] sm:$0xff] %v1260_v54  ;;  %1520 = vst [vmem:[#allocation19_spill] sm:$0xff] %v1265_v63  ;;  %v1270_v55 = vld [vmem:[%s1508_s1 + $0x228] sm:$0xff]  ;;  %v1275_v39 = vld [vmem:[%s1508_s1 + $0x230] sm:$0xff] }
  0x1a   :  { %1521 = vst [vmem:[#allocation20_spill] sm:$0xff] %v1270_v55  ;;  %1522 = vst [vmem:[#allocation21_spill] sm:$0xff] %v1275_v39  ;;  %v1280_v47 = vld [vmem:[%s1508_s1 + $0x238] sm:$0xff]  ;;  %v1285_v54 = vld [vmem:[%s1508_s1 + $0x240] sm:$0xff] }
  0x1b   :  { %1523 = vst [vmem:[#allocation22_spill] sm:$0xff] %v1280_v47  ;;  %1524 = vst [vmem:[#allocation23_spill] sm:$0xff] %v1285_v54  ;;  %v1290_v63 = vld [vmem:[%s1508_s1 + $0x248] sm:$0xff]  ;;  %v1295_v55 = vld [vmem:[%s1508_s1 + $0x250] sm:$0xff] }
  0x1c   :  { %1525 = vst [vmem:[#allocation24_spill] sm:$0xff] %v1290_v63  ;;  %1526 = vst [vmem:[#allocation25_spill] sm:$0xff] %v1295_v55  ;;  %v1300_v39 = vld [vmem:[%s1508_s1 + $0x258] sm:$0xff]  ;;  %v1305_v47 = vld [vmem:[%s1508_s1 + $0x260] sm:$0xff] }
  0x1d   :  { %1527 = vst [vmem:[#allocation26_spill] sm:$0xff] %v1300_v39  ;;  %1528 = vst [vmem:[#allocation27_spill] sm:$0xff] %v1305_v47  ;;  %v1310_v54 = vld [vmem:[%s1508_s1 + $0x268] sm:$0xff]  ;;  %v1315_v63 = vld [vmem:[%s1508_s1 + $0x270] sm:$0xff] }
  0x1e   :  { %1529 = vst [vmem:[#allocation28_spill] sm:$0xff] %v1310_v54  ;;  %1530 = vst [vmem:[#allocation29_spill] sm:$0xff] %v1315_v63  ;;  %v1320_v55 = vld [vmem:[%s1508_s1 + $0x278] sm:$0xff]  ;;  %v1325_v39 = vld [vmem:[%s1508_s1 + $0x280] sm:$0xff] }
  0x1f   :  { %1531 = vst [vmem:[#allocation30_spill] sm:$0xff] %v1320_v55  ;;  %1532 = vst [vmem:[#allocation31_spill] sm:$0xff] %v1325_v39  ;;  %v1330_v47 = vld [vmem:[%s1508_s1 + $0x288] sm:$0xff]  ;;  %v1335_v54 = vld [vmem:[%s1508_s1 + $0x290] sm:$0xff] }
  0x20   :  { %1533 = vst [vmem:[#allocation32_spill] sm:$0xff] %v1330_v47  ;;  %1534 = vst [vmem:[#allocation33_spill] sm:$0xff] %v1335_v54  ;;  %v1340_v63 = vld [vmem:[%s1508_s1 + $0x298] sm:$0xff]  ;;  %v1345_v55 = vld [vmem:[%s1508_s1 + $0x2a0] sm:$0xff] }
  0x21   :  { %1535 = vst [vmem:[#allocation34_spill] sm:$0xff] %v1340_v63  ;;  %1536 = vst [vmem:[#allocation35_spill] sm:$0xff] %v1345_v55  ;;  %v1350_v39 = vld [vmem:[%s1508_s1 + $0x2a8] sm:$0xff]  ;;  %v1355_v47 = vld [vmem:[%s1508_s1 + $0x2b0] sm:$0xff] }
  0x22   :  { %1537 = vst [vmem:[#allocation36_spill] sm:$0xff] %v1355_v47  ;;  %v1360_v54 = vld [vmem:[%s1508_s1 + $0x2b8] sm:$0xff]  ;;  %v1365_v63 = vld [vmem:[%s1508_s1 + $0x2c0] sm:$0xff]  ;;  %v1370_v55 = vld [vmem:[%s1508_s1 + $0x2c8] sm:$0xff] }
  0x23   :  { %1538 = vst [vmem:[#allocation37_spill] sm:$0xff] %v1370_v55 }
  0x24   :  { %234 = vsyncadd [#allocation4], 11520 }
  0x25   :  { %897 = dma.done.wait [#allocation4], 11520 }
  0x26   :  { %898 = vsyncadd [#allocation4], 4294955776 }
  0x27   :  { %v256_v47 = vld [vmem:[%s1509_s2] sm:$0x1] }
  0x28   :  { %257 = vst [vmem:[#allocation3] sm:$0x1] %v256_v47 }
  0x29   :  { %282 = vsyncadd [#allocation6], 16 }
  0x2a   :  { %899 = dma.done.wait [#allocation6], 16 }
  0x2b   :  { %900 = vsyncadd [#allocation6], 4294967280  ;;  %760 = vmatprep.subr.bf16.mxu0 %v965_v8  ;;  %782 = vmatprep.subr.bf16.mxu1 %v1045_v24  ;;  %v873_v55 = vld [vmem:[%s1507_s0 + $0x4] ss:$48 sps:$4 sm:$0xff]   ;;  %v876_v47 = vld [vmem:[%s1507_s0 + $0xc] ss:$48 sps:$4 sm:$0xff]  }
  0x2c   :  { %761 = vmatpush3.bf16.msra.mxu0 %v925_v0  ;;  %783 = vmatpush3.bf16.msra.mxu1 %v1005_v16  ;;  %v871_v0 = vld [vmem:[%s1507_s0] ss:$48 sps:$4 sm:$0xff]   ;;  %v880_v8 = vld [vmem:[%s1507_s0 + $0x18] ss:$48 sps:$4 sm:$0xff]   ;;  %vm454_vm0 = vcmask 261120  }
  0x2d   :  { %762 = vmatprep.subr.bf16.mxu0 %v970_v9  ;;  %784 = vmatprep.subr.bf16.mxu1 %v1050_v25  ;;  %v1542_v9 = vld [vmem:[#allocation10_spill] sm:$0xff]  ;;  %v1546_v16 = vld [vmem:[#allocation31_spill] sm:$0xff] }
  0x2e   :  { %490 = vmatprep.mubr.bf16.mxu0 %v873_v55  ;;  %531 = vmatprep.mubr.bf16.mxu1 %v876_v47  ;;  %v1554_v24 = vld [vmem:[#allocation18_spill] sm:$0xff] }
  0x2f   :  { %v1555_v25 = vld [vmem:[#allocation34_spill] sm:$0xff] }
  0x30   :  { %763 = vmatpush3.bf16.msra.mxu0 %v930_v1  ;;  %785 = vmatpush3.bf16.msra.mxu1 %v1010_v17  ;;  %v874_v1 = vld [vmem:[%s1507_s0 + $0x8] ss:$48 sps:$4 sm:$0xff]  }
  0x31   :  { %764 = vmatprep.subr.bf16.mxu0 %v975_v10  ;;  %786 = vmatprep.subr.bf16.mxu1 %v1055_v26  ;;  %v1543_v10 = vld [vmem:[#allocation13_spill] sm:$0xff]  ;;  %v1547_v17 = vld [vmem:[#allocation24_spill] sm:$0xff]  ;;  %v1556_v26 = vld [vmem:[#allocation27_spill] sm:$0xff] }
  0x34   :  { %765 = vmatpush3.bf16.msra.mxu0 %v935_v2  ;;  %787 = vmatpush3.bf16.msra.mxu1 %v1015_v18  ;;  %v879_v2 = vld [vmem:[%s1507_s0 + $0x14] ss:$48 sps:$4 sm:$0xff]  }
  0x35   :  { %766 = vmatprep.subr.bf16.mxu0 %v980_v11  ;;  %788 = vmatprep.subr.bf16.mxu1 %v1060_v27  ;;  %v1544_v11 = vld [vmem:[#allocation23_spill] sm:$0xff]  ;;  %v1548_v18 = vld [vmem:[#allocation16_spill] sm:$0xff] }
  0x36   :  { %v1557_v27 = vld [vmem:[#allocation19_spill] sm:$0xff] }
  0x38   :  { %767 = vmatpush3.bf16.msra.mxu0 %v940_v3  ;;  %789 = vmatpush3.bf16.msra.mxu1 %v1020_v19  ;;  %v882_v3 = vld [vmem:[%s1507_s0 + $0x1c] ss:$48 sps:$4 sm:$0xff]   ;;  %v1549_v19 = vld [vmem:[#allocation32_spill] sm:$0xff] }
  0x39   :  { %768 = vmatprep.subr.bf16.mxu0 %v985_v12  ;;  %790 = vmatprep.subr.bf16.mxu1 %v1065_v28  ;;  %v901_v12 = vmov 0   ;;  %v1558_v28 = vld [vmem:[#allocation35_spill] sm:$0xff] }
  0x3c   :  { %769 = vmatpush3.bf16.msra.mxu0 %v945_v4  ;;  %791 = vmatpush3.bf16.msra.mxu1 %v1025_v20  ;;  %v1539_v4 = vld [vmem:[#allocation12_spill] sm:$0xff]  ;;  %v1550_v20 = vld [vmem:[#allocation25_spill] sm:$0xff] }
  0x3d   :  { %770 = vmatprep.subr.bf16.mxu0 %v990_v13  ;;  %792 = vmatprep.subr.bf16.mxu1 %v1070_v29  ;;  %v885_v13 = vld [vmem:[%s1507_s0 + $0x24] ss:$48 sps:$4 sm:$0xff]  }
  0x3e   :  { %v1559_v29 = vld [vmem:[#allocation28_spill] sm:$0xff] }
  0x40   :  { %771 = vmatpush3.bf16.msra.mxu0 %v950_v5  ;;  %793 = vmatpush3.bf16.msra.mxu1 %v1030_v21  ;;  %v1540_v5 = vld [vmem:[#allocation11_spill] sm:$0xff]  ;;  %v1551_v21 = vld [vmem:[#allocation17_spill] sm:$0xff] }
  0x41   :  { %772 = vmatprep.subr.bf16.mxu0 %v995_v14  ;;  %794 = vmatprep.subr.bf16.mxu1 %v1075_v30  ;;  %v886_v14 = vld [vmem:[%s1507_s0 + $0x2c] ss:$48 sps:$4 sm:$0xff]   ;;  %v1560_v30 = vld [vmem:[#allocation20_spill] sm:$0xff] }
  0x44   :  { %773 = vmatpush3.bf16.msra.mxu0 %v955_v6  ;;  %795 = vmatpush3.bf16.msra.mxu1 %v1035_v22  ;;  %v1541_v6 = vld [vmem:[#allocation14_spill] sm:$0xff]  ;;  %v1552_v22 = vld [vmem:[#allocation33_spill] sm:$0xff] }
  0x45   :  { %774 = vmatprep.subr.bf16.mxu0 %v1000_v15  ;;  %796 = vmatprep.subr.bf16.mxu1 %v1080_v31  ;;  %v1545_v15 = vld [vmem:[#allocation15_spill] sm:$0xff]  ;;  %v1561_v31 = vld [vmem:[#allocation29_spill] sm:$0xff] }
  0x48   :  { %775 = vmatpush3.bf16.msra.mxu0 %v960_v7  ;;  %797 = vmatpush3.bf16.msra.mxu1 %v1040_v23  ;;  %v877_v7 = vld [vmem:[%s1507_s0 + $0x10] ss:$48 sps:$4 sm:$0xff]  }
  0x49   :  { %804 = vmatprep.subr.bf16.mxu0 %v1125_v40  ;;  %826 = vmatprep.subr.bf16.mxu1 %v1205_v56  ;;  %v1553_v23 = vld [vmem:[#allocation26_spill] sm:$0xff] }
  0x4b   :  { %491 = vmatmul.mubr.bf16.vlgmr.msra.gmra.mrb[0].mxu0 %v871_v0  ;;  %532 = vmatmul.mubr.bf16.vlgmr.msra.gmra.mrb[0].mxu1 %v874_v1 }
  0x4c   :  { %805 = vmatpush3.bf16.msra.mxu0 %v1085_v32  ;;  %827 = vmatpush3.bf16.msra.mxu1 %v1165_v48  ;;  %v1562_v32 = vld [vmem:[#allocation21_spill] sm:$0xff] }
  0x4d   :  { %806 = vmatprep.subr.bf16.mxu0 %v1130_v41  ;;  %828 = vmatprep.subr.bf16.mxu1 %v1210_v57  ;;  %v746_v41 = vld [vmem:[#allocation3] ss:$0 sm:$0xff] }
  0x4e   :  { %572 = vmatprep.mubr.bf16.mxu0 %v879_v2  ;;  %613 = vmatprep.mubr.bf16.mxu1 %v882_v3 }
  0x50   :  { %807 = vmatpush3.bf16.msra.mxu0 %v1090_v33  ;;  %829 = vmatpush3.bf16.msra.mxu1 %v1170_v49  ;;  %v1563_v33 = vld [vmem:[#allocation36_spill] sm:$0xff] }
  0x51   :  { %808 = vmatprep.subr.bf16.mxu0 %v1135_v42  ;;  %830 = vmatprep.subr.bf16.mxu1 %v1215_v58 }
  0x54   :  { %809 = vmatpush3.bf16.msra.mxu0 %v1095_v34  ;;  %831 = vmatpush3.bf16.msra.mxu1 %v1175_v50  ;;  %v1564_v34 = vld [vmem:[#allocation30_spill] sm:$0xff] }
  0x55   :  { %810 = vmatprep.subr.bf16.mxu0 %v1140_v43  ;;  %832 = vmatprep.subr.bf16.mxu1 %v1220_v59 }
  0x58   :  { %811 = vmatpush3.bf16.msra.mxu0 %v1100_v35  ;;  %833 = vmatpush3.bf16.msra.mxu1 %v1180_v51  ;;  %v883_v35 = vld [vmem:[%s1507_s0 + $0x20] ss:$48 sps:$4 sm:$0xff]  }
  0x59   :  { %812 = vmatprep.subr.bf16.mxu0 %v1145_v44  ;;  %834 = vmatprep.subr.bf16.mxu1 %v1225_v60 }
  0x5c   :  { %813 = vmatpush3.bf16.msra.mxu0 %v1105_v36  ;;  %835 = vmatpush3.bf16.msra.mxu1 %v1185_v52  ;;  %v1565_v36 = vld [vmem:[#allocation22_spill] sm:$0xff] }
  0x5d   :  { %814 = vmatprep.subr.bf16.mxu0 %v1150_v45  ;;  %836 = vmatprep.subr.bf16.mxu1 %v1230_v61 }
  0x60   :  { %815 = vmatpush3.bf16.msra.mxu0 %v1110_v37  ;;  %837 = vmatpush3.bf16.msra.mxu1 %v1190_v53  ;;  %v888_v37 = vld [vmem:[%s1507_s0 + $0x28] ss:$48 sps:$4 sm:$0xff]  }
  0x61   :  { %816 = vmatprep.subr.bf16.mxu0 %v1155_v46  ;;  %838 = vmatprep.subr.bf16.mxu1 %v1235_v62 }
  0x64   :  { %817 = vmatpush3.bf16.msra.mxu0 %v1115_v38  ;;  %839 = vmatpush3.bf16.msra.mxu1 %v1539_v4  ;;  %v1566_v38 = vld [vmem:[#allocation37_spill] sm:$0xff] }
  0x65   :  { %818 = vmatprep.subr.bf16.mxu0 %v1540_v5  ;;  %840 = vmatprep.subr.bf16.mxu1 %v1541_v6 }
  0x68   :  { %819 = vmatpush3.bf16.msra.mxu0 %v1542_v9  ;;  %841 = vmatpush3.bf16.msra.mxu1 %v1543_v10 }
  0x69   :  { %848 = vmatprep.subr.bf16.mxu0 %v1544_v11  ;;  %663 = vmatprep.subr.bf16.mxu1 %v901_v12 }
  0x6b   :  { %573 = vmatmul.mubr.bf16.vlgmr.msra.gmra.mrb[4].mxu0 %v877_v7  ;;  %614 = vmatmul.mubr.bf16.vlgmr.msra.gmra.mrb[4].mxu1 %v880_v8 }
  0x6c   :  { %849 = vmatpush3.bf16.msra.mxu0 %v1545_v15  ;;  %664 = vmatpush1.bf16.msra.mxu1 %v1546_v16 }
  0x6d   :  { %850 = vmatprep.subr.bf16.mxu0 %v1547_v17  ;;  %665 = vmatprep.subr.bf16.mxu1 %v901_v12 }
  0x6e   :  { %654 = vmatprep.mubr.bf16.mxu0 %v885_v13  ;;  %759 = vmatprep.mubr.msk.bf16.mxu1 %vm454_vm0, %v886_v14 }
  0x70   :  { %851 = vmatpush3.bf16.msra.mxu0 %v1548_v18  ;;  %666 = vmatpush1.bf16.msra.mxu1 %v1549_v19 }
  0x71   :  { %852 = vmatprep.subr.bf16.mxu0 %v1550_v20  ;;  %667 = vmatprep.subr.bf16.mxu1 %v901_v12 }
  0x74   :  { %853 = vmatpush3.bf16.msra.mxu0 %v1551_v21  ;;  %668 = vmatpush1.bf16.msra.mxu1 %v1552_v22 }
  0x75   :  { %854 = vmatprep.subr.bf16.mxu0 %v1553_v23  ;;  %669 = vmatprep.subr.bf16.mxu1 %v901_v12 }
  0x78   :  { %855 = vmatpush3.bf16.msra.mxu0 %v1554_v24  ;;  %670 = vmatpush1.bf16.msra.mxu1 %v1555_v25 }
  0x79   :  { %856 = vmatprep.subr.bf16.mxu0 %v1556_v26  ;;  %671 = vmatprep.subr.bf16.mxu1 %v901_v12 }
  0x7c   :  { %857 = vmatpush3.bf16.msra.mxu0 %v1557_v27  ;;  %672 = vmatpush1.bf16.msra.mxu1 %v1558_v28 }
  0x7d   :  { %858 = vmatprep.subr.bf16.mxu0 %v1559_v29  ;;  %673 = vmatprep.subr.bf16.mxu1 %v901_v12 }
  0x80   :  { %859 = vmatpush3.bf16.msra.mxu0 %v1560_v30  ;;  %674 = vmatpush1.bf16.msra.mxu1 %v1350_v39 }
  0x81   :  { %860 = vmatprep.subr.bf16.mxu0 %v1561_v31  ;;  %675 = vmatprep.subr.bf16.mxu1 %v901_v12 }
  0x84   :  { %861 = vmatpush3.bf16.msra.mxu0 %v1562_v32  ;;  %676 = vmatpush1.bf16.msra.mxu1 %v1563_v33 }
  0x85   :  { %862 = vmatprep.subr.bf16.mxu0 %v1564_v34  ;;  %677 = vmatprep.subr.bf16.mxu1 %v901_v12 }
  0x88   :  { %863 = vmatpush3.bf16.msra.mxu0 %v1565_v36  ;;  %678 = vmatpush1.bf16.msra.mxu1 %v1360_v54 }
  0x89   :  { %679 = vmatprep.subr.bf16.mxu1 %v901_v12 }
  0x8b   :  { %655 = vmatmul.mubr.bf16.vlgmr.msra.gmra.mrb[8].mxu0 %v883_v35 }
  0x8c   :  { %680 = vmatpush1.bf16.msra.mxu1 %v1365_v63 }
  0x8d   :  { %681 = vmatprep.subr.bf16.mxu1 %v901_v12 }
  0x90   :  { %682 = vmatpush1.bf16.msra.mxu1 %v1566_v38 }
  0x93   :  { %696 = vmatmul.mubr.bf16.vlgmr.msra.gmra.mrb[8].mxu1 %v888_v37 }
 0x11e   :  { %v776_v39 = vpop.f32.mrb[0].mxu0  ;;  %v798_v40 = vpop.f32.mrb[0].mxu1 }
 0x11f   :  { %v777_v42 = vpop.f32.mrb[1].mxu0  ;;  %v799_v43 = vpop.f32.mrb[1].mxu1 }
 0x120   :  { %v778_v44 = vadd.f32 %v777_v42, %v776_v39  ;;  %v800_v45 = vadd.f32 %v799_v43, %v798_v40  ;;  %v779_v46 = vpop.f32.mrb[2].mxu0  ;;  %v801_v48 = vpop.f32.mrb[2].mxu1 }
 0x121   :  { %v780_v49 = vpop.f32.mrb[3].mxu0  ;;  %v802_v50 = vpop.f32.mrb[3].mxu1 }
 0x122   :  { %v493_v51 = vadd.f32 %v778_v44, %v746_v41  ;;  %v781_v52 = vadd.f32 %v780_v49, %v779_v46  ;;  %v803_v53 = vadd.f32 %v802_v50, %v801_v48 }
 0x124   :  { %v534_v54 = vadd.f32 %v800_v45, %v493_v51  ;;  %v496_v55 = vadd.f32 %v781_v52, %v746_v41 }
 0x126   :  { %v537_v56 = vadd.f32 %v803_v53, %v496_v55 }
 0x13e   :  { %v820_v57 = vpop.f32.mrb[4].mxu0  ;;  %v842_v58 = vpop.f32.mrb[4].mxu1 }
 0x13f   :  { %v821_v59 = vpop.f32.mrb[5].mxu0  ;;  %v843_v60 = vpop.f32.mrb[5].mxu1 }
 0x140   :  { %v822_v61 = vadd.f32 %v821_v59, %v820_v57  ;;  %v844_v62 = vadd.f32 %v843_v60, %v842_v58  ;;  %v823_v63 = vpop.f32.mrb[6].mxu0  ;;  %v845_v47 = vpop.f32.mrb[6].mxu1 }
 0x141   :  { %v824_v0 = vpop.f32.mrb[7].mxu0  ;;  %v846_v1 = vpop.f32.mrb[7].mxu1 }
 0x142   :  { %v575_v2 = vadd.f32 %v822_v61, %v534_v54  ;;  %v825_v3 = vadd.f32 %v824_v0, %v823_v63  ;;  %v847_v4 = vadd.f32 %v846_v1, %v845_v47 }
 0x144   :  { %v616_v5 = vadd.f32 %v844_v62, %v575_v2  ;;  %v578_v6 = vadd.f32 %v825_v3, %v537_v56 }
 0x146   :  { %v619_v7 = vadd.f32 %v847_v4, %v578_v6 }
 0x15e   :  { %v864_v8 = vpop.f32.mrb[8].mxu0 }
 0x15f   :  { %v865_v9 = vpop.f32.mrb[9].mxu0 }
 0x160   :  { %v866_v10 = vadd.f32 %v865_v9, %v864_v8  ;;  %v867_v11 = vpop.f32.mrb[10].mxu0 }
 0x161   :  { %v868_v12 = vpop.f32.mrb[11].mxu0 }
 0x162   :  { %v869_v13 = vadd.f32 %v868_v12, %v867_v11  ;;  %v657_v14 = vadd.f32 %v866_v10, %v616_v5 }
 0x164   :  { %v660_v15 = vadd.f32 %v869_v13, %v619_v7 }
 0x166   :  { %v697_v16 = vpop.f32.mrb[8].mxu1 }
 0x167   :  { %v698_v17 = vadd.f32 %v697_v16, %v657_v14  ;;  %v699_v18 = vpop.f32.mrb[9].mxu1 }
 0x168   :  { %v700_v19 = vpop.f32.mrb[10].mxu1 }
 0x169   :  { %v701_v20 = vadd.f32 %v700_v19, %v660_v15  ;;  %v702_v21 = vpop.f32.mrb[11].mxu1  ;;  %704 = vmax.xlane.f32.xlu0 %v698_v17 }
 0x16d   :  { %706 = vmax.xlane.f32.xlu0 %v701_v20 }
 0x1f6   :  { %v705_v22 = vpop.xlane.xlu0 %704 }
 0x1f7   :  { %v708_v23 = vsub.f32 %v698_v17, %v705_v22 }
 0x1f9   :  { %v710_v24 = vmul.f32 1.442695, %v708_v23 }
 0x1fa   :  { %v707_v25 = vpop.xlane.xlu0 %706 }
 0x1fb   :  { %889 = vpow2.f32 %v710_v24  ;;  %v709_v26 = vsub.f32 %v701_v20, %v707_v25 }
 0x1fd   :  { %v712_v27 = vmul.f32 1.442695, %v709_v26 }
 0x1ff   :  { %891 = vpow2.f32 %v712_v27 }
 0x205   :  { %v890_v28 = vpop.eup %889 }
 0x206   :  { %714 = vadd.xlane.f32.xlu1 %v890_v28 }
 0x209   :  { %v892_v29 = vpop.eup %891 }
 0x20a   :  { %716 = vadd.xlane.f32.xlu1 %v892_v29 }
 0x293   :  { %v715_v30 = vpop.xlane.xlu1 %714 }
 0x294   :  { %893 = vrcp.f32 %v715_v30 }
 0x297   :  { %v717_v31 = vpop.xlane.xlu1 %716 }
 0x298   :  { %895 = vrcp.f32 %v717_v31 }
 0x29e   :  { %v894_v32 = vpop.eup %893 }
 0x29f   :  { %v719_v33 = vmul.f32 %v894_v32, %v890_v28 }
 0x2a1   :  { %722 = vst [vmem:[%s1510_s3] sm:$0xff] %v719_v33 }
 0x2a2   :  { %v896_v34 = vpop.eup %895 }
 0x2a3   :  { %v721_v35 = vmul.f32 %v896_v34, %v892_v29 }
 0x2a5   :  { %723 = vst [vmem:[%s1510_s3 + $0x8] sm:$0xff] %v721_v35 }

</bundles_post_ra>
